<compile_context>
chip_gen: v7x
topology: tpu7x:2x2x1
jax: 0.10.0
libtpu: 0.0.40
codegen_flags: <defaults>
</compile_context>

<pallas_src>
import math

import jax
import jax.numpy as jnp
from jax.experimental import pallas as pl
from jax.experimental.pallas import tpu as pltpu


def _round_up(x: int, m: int) -> int:
    return ((x + m - 1) // m) * m


# --------------------------------------------------------------------------
# Kernel
# --------------------------------------------------------------------------
def _message_policy_kernel(x_ref, w1_ref, b1_ref, w2_ref, b2_ref, out_ref, acc_ref):
    # x_ref:  [TB, TK]      f32 (cast to compute dtype in-kernel)
    # w1_ref: [TK, HID_p]   bf16 (or f32)
    # b1_ref: [1, HID_p]    f32
    # w2_ref: [HID_p, NA_p] bf16 (or f32); padded columns are exactly zero
    # b2_ref: [1, NA_p]     f32; padded columns hold -1e30
    # out_ref:[TB, NA_p]    f32
    # acc_ref:[TB, HID_p]   f32 scratch accumulator (persists across K steps)
    k = pl.program_id(1)

    @pl.when(k == 0)
    def _():
        acc_ref[...] = jnp.zeros_like(acc_ref)

    # Hidden layer partial product: cast x on the VPU, accumulate in f32.
    x = x_ref[...].astype(w1_ref.dtype)
    acc_ref[...] += jnp.dot(x, w1_ref[...], preferred_element_type=jnp.float32)

    @pl.when(k == pl.num_programs(1) - 1)
    def _():
        # ReLU in f32 (v5e-safe VPU path).
        h = jnp.maximum(acc_ref[...] + b1_ref[...], 0.0)
        # Action head: bf16 matmul operands, f32 accumulation; padded bias
        # columns (-1e30, zero w2 columns) contribute exactly 0 after exp().
        logits = jnp.dot(h.astype(w2_ref.dtype), w2_ref[...],
                         preferred_element_type=jnp.float32) + b2_ref[...]
        # Numerically-stable log_softmax over the lane-dense action axis.
        m = jnp.max(logits, axis=-1, keepdims=True)
        z = logits - m
        lse = jnp.log(jnp.sum(jnp.exp(z), axis=-1, keepdims=True))
        out_ref[...] = z - lse


# --------------------------------------------------------------------------
# One-time parameter preparation (call at model-init, NOT per forward)
# --------------------------------------------------------------------------
def _plan_dims(d_in: int, hid: int, n_act: int):
    hid_p = _round_up(hid, 128)
    n_act_p = _round_up(n_act, 128)
    # K tile: cap each w1 block at ~8 MiB so even double-buffered blocks stay
    # far inside v7x's 64 MiB per-core VMEM.
    tk_cap = max(128, ((8 << 20) // (hid_p * 2)) // 128 * 128)
    tk = min(_round_up(d_in, 128), tk_cap)
    d_in_p = _round_up(d_in, tk)
    return d_in_p, hid_p, n_act_p, tk


def prepare_message_policy_params(w1, b1, w2, b2, *, compute_dtype=jnp.bfloat16):
    """Pad + cast the inner-MLP weights once.

    Must be called with the ORIGINAL (unpadded) weights: the exactness of the
    padded log_softmax relies on w2's padded columns being exactly zero and
    b2's padded columns being exactly -1e30, which is established here.
    """
    w1 = jnp.asarray(w1)
    b1 = jnp.asarray(b1)
    w2 = jnp.asarray(w2)
    b2 = jnp.asarray(b2)
    d_in, hid = int(w1.shape[0]), int(w1.shape[1])
    n_act = int(w2.shape[1])
    assert w2.shape == (hid, n_act), "w2 must be the unpadded (hid, n_act) matrix"
    assert b1.shape == (hid,) and b2.shape == (n_act,), "biases must be unpadded"

    d_in_p, hid_p, n_act_p, tk = _plan_dims(d_in, hid, n_act)

    w1_p = jnp.pad(w1.astype(compute_dtype),
                   ((0, d_in_p - d_in), (0, hid_p - hid)))
    b1_p = jnp.pad(b1.astype(jnp.float32).reshape(1, hid),
                   ((0, 0), (0, hid_p - hid)))
    w2_p = jnp.pad(w2.astype(compute_dtype),
                   ((0, hid_p - hid), (0, n_act_p - n_act)))
    b2_p = jnp.pad(b2.astype(jnp.float32).reshape(1, n_act),
                   ((0, 0), (0, n_act_p - n_act)), constant_values=-1e30)

    return dict(
        w1=w1_p, b1=b1_p, w2=w2_p, b2=b2_p,
        d_in=d_in, hid=hid, n_act=n_act,
        d_in_p=d_in_p, hid_p=hid_p, n_act_p=n_act_p, tk=tk,
    )


# --------------------------------------------------------------------------
# Forward
# --------------------------------------------------------------------------
def message_policy_forward(x_obs, params):
    """Returns log_a: [B, N_ACT] log-probabilities over the message space."""
    B = int(x_obs.shape[0])
    d_in = int(math.prod(x_obs.shape[1:]))
    assert d_in == params["d_in"], "observation size does not match prepared weights"

    d_in_p = params["d_in_p"]
    hid_p = params["hid_p"]
    n_act_p = params["n_act_p"]
    n_act = params["n_act"]
    tk = params["tk"]
    w1_p, b1_p, w2_p, b2_p = params["w1"], params["b1"], params["w2"], params["b2"]

    # Batch tiling: >=2 grid steps (pipelining + v7x dual-TC sharding), tiles
    # of up to 512 rows to amortize the ~0.35 us per-step overhead.
    tb = min(512, max(8, _round_up((B + 1) // 2, 8)))
    b_p = _round_up(B, tb)
    if b_p // tb < 2:
        b_p = 2 * tb

    # x stays f32 in HBM; the bf16 cast happens in-kernel (VPU).  Only build a
    # padded copy when the shapes are not already tile-aligned.
    x_flat = x_obs.reshape(B, d_in).astype(jnp.float32)
    if (b_p, d_in_p) != (B, d_in):
        x_flat = jnp.pad(x_flat, ((0, b_p - B), (0, d_in_p - d_in)))

    nk = d_in_p // tk
    grid = (b_p // tb, nk)

    # VMEM budget: actual double-buffered block sizes + accumulator, +50%
    # headroom, capped at 48 MiB (safe on v7x's 64 MiB per-core VMEM).
    itm_w = w1_p.dtype.itemsize
    vmem_need = (
        2 * tb * tk * 4                       # x blocks (f32)
        + 2 * tk * hid_p * itm_w              # w1 blocks
        + 2 * hid_p * 4                       # b1
        + 2 * hid_p * n_act_p * itm_w         # w2
        + 2 * n_act_p * 4                     # b2
        + 2 * tb * n_act_p * 4                # out blocks
        + tb * hid_p * 4                      # accumulator scratch
    )
    vmem_limit = min(48 << 20, max(8 << 20, int(vmem_need * 1.5)))

    cost = pl.CostEstimate(
        flops=2 * b_p * d_in_p * hid_p + 2 * b_p * hid_p * n_act_p,
        transcendentals=b_p * n_act_p + b_p,
        bytes_accessed=int(
            x_flat.size * 4
            + w1_p.size * itm_w + w2_p.size * itm_w
            + b1_p.size * 4 + b2_p.size * 4
            + b_p * n_act_p * 4
        ),
    )

    out_pad = pl.pallas_call(
        _message_policy_kernel,
        out_shape=jax.ShapeDtypeStruct((b_p, n_act_p), jnp.float32),
        grid=grid,
        in_specs=[
            pl.BlockSpec((tb, tk), lambda i, k: (i, k)),        # x: batch x K tiled
            pl.BlockSpec((tk, hid_p), lambda i, k: (k, 0)),     # w1: K tiled
            pl.BlockSpec((1, hid_p), lambda i, k: (0, 0)),      # b1
            pl.BlockSpec((hid_p, n_act_p), lambda i, k: (0, 0)),  # w2
            pl.BlockSpec((1, n_act_p), lambda i, k: (0, 0)),    # b2
        ],
        out_specs=pl.BlockSpec((tb, n_act_p), lambda i, k: (i, 0)),
        scratch_shapes=[pltpu.VMEM((tb, hid_p), jnp.float32)],  # f32 hidden accumulator
        compiler_params=pltpu.CompilerParams(
            dimension_semantics=("parallel", "arbitrary"),
            vmem_limit_bytes=vmem_limit,
        ),
        cost_estimate=cost,
    )(x_flat, w1_p, b1_p, w2_p, b2_p)

    return out_pad[:B, :n_act]


# --------------------------------------------------------------------------
# Self-test
# --------------------------------------------------------------------------
if __name__ == "__main__":
    # Small, deterministic example consistent with an image-like observation.
    B, C, H, W = 2, 4, 16, 16
    HID = 32
    N_ACT = 8  # Discrete message/action space size

    key = jax.random.PRNGKey(0)
    kx, kw1, kb1, kw2, kb2 = jax.random.split(key, 5)

    x = jax.random.normal(kx, (B, C, H, W), dtype=jnp.float32)      # NCHW obs
    D_IN = C * H * W
    w1 = jax.random.normal(kw1, (D_IN, HID), dtype=jnp.float32) * 0.02
    b1 = jax.random.normal(kb1, (HID,), dtype=jnp.float32) * 0.01
    w2 = jax.random.normal(kw2, (HID, N_ACT), dtype=jnp.float32) * 0.02
    b2 = jax.random.normal(kb2, (N_ACT,), dtype=jnp.float32) * 0.01

    # Weights are padded/cast exactly once, at "model init" time.
    params = prepare_message_policy_params(w1, b1, w2, b2)

    log_a = message_policy_forward(x, params)
    jax.block_until_ready(log_a)

    # sanity: shape, finiteness, rows sum to ~1 in prob space, matches JAX ref.
    assert log_a.shape == (B, N_ACT)
    assert bool(jnp.all(jnp.isfinite(log_a)))
    probs_sum = jnp.sum(jnp.exp(log_a), axis=-1)
    assert bool(jnp.all(jnp.abs(probs_sum - 1.0) < 1e-4))

    # pure-JAX reference with matching matmul dtypes (bf16 operands, f32 accum).
    xf = x.reshape(B, -1)
    h_ref = jnp.maximum(
        jnp.dot(xf.astype(jnp.bfloat16), w1.astype(jnp.bfloat16),
                preferred_element_type=jnp.float32) + b1, 0.0)
    logits_ref = jnp.dot(h_ref.astype(jnp.bfloat16), w2.astype(jnp.bfloat16),
                         preferred_element_type=jnp.float32) + b2
    ref = jax.nn.log_softmax(logits_ref, axis=-1)
    assert bool(jnp.all(jnp.abs(log_a - ref) < 2e-3))

    print("KERNEL_OK")
</pallas_src>

<mosaic_0001>
module attributes {stable_mosaic.version = 11 : i64} {
  func.func @_message_policy_kernel(%arg0: i32, %arg1: i32, %arg2: memref<8x1024xf32, #tpu.memory_space<vmem>>, %arg3: memref<1024x128xbf16, #tpu.memory_space<vmem>>, %arg4: memref<1x128xf32, #tpu.memory_space<vmem>>, %arg5: memref<128x128xbf16, #tpu.memory_space<vmem>>, %arg6: memref<1x128xf32, #tpu.memory_space<vmem>>, %arg7: memref<8x128xf32, #tpu.memory_space<vmem>>, %arg8: memref<8x128xf32, #tpu.memory_space<vmem>>) attributes {dimension_semantics = [#tpu.dimension_semantics<parallel>, #tpu.dimension_semantics<arbitrary>], iteration_bounds = array<i64: 2, 1>, scalar_prefetch = 0 : i64, scratch_operands = 1 : i64, tpu.core_type = #tpu.core_type<tc>, window_params = [{transform_indices = @transform_0, window_bounds = array<i64: 8, 1024>}, {transform_indices = @transform_1, window_bounds = array<i64: 1024, 128>}, {pipeline_mode = #tpu.pipeline_mode<synchronous>, transform_indices = @transform_2, window_bounds = array<i64: 1, 128>}, {pipeline_mode = #tpu.pipeline_mode<synchronous>, transform_indices = @transform_3, window_bounds = array<i64: 128, 128>}, {pipeline_mode = #tpu.pipeline_mode<synchronous>, transform_indices = @transform_4, window_bounds = array<i64: 1, 128>}, {transform_indices = @transform_5, window_bounds = array<i64: 8, 128>}]} {
    %c0_i32 = arith.constant 0 : i32
    %0 = arith.cmpi eq, %arg1, %c0_i32 : i32
    %1 = arith.extui %0 : i1 to i32
    %c0_i32_0 = arith.constant 0 : i32
    %2 = arith.cmpi ne, %1, %c0_i32_0 : i32
    scf.if %2 {
      %cst_10 = arith.constant 0.000000e+00 : f32
      %13 = vector.broadcast %cst_10 : f32 to vector<8x128xf32>
      %c0_11 = arith.constant 0 : index
      %c0_12 = arith.constant 0 : index
      %14 = vector.load %arg8[%c0_11, %c0_12] : memref<8x128xf32, #tpu.memory_space<vmem>>, vector<8x128xf32>
      tpu.vector_store %arg8[%c0_11, %c0_12], %13 {strides = array<i32>} : memref<8x128xf32, #tpu.memory_space<vmem>>, vector<8x128xf32>,
    } else {
    }
    %c0 = arith.constant 0 : index
    %c0_1 = arith.constant 0 : index
    %3 = vector.load %arg2[%c0, %c0_1] : memref<8x1024xf32, #tpu.memory_space<vmem>>, vector<8x1024xf32>
    %4 = arith.truncf %3 : vector<8x1024xf32> to vector<8x1024xbf16>
    %c0_2 = arith.constant 0 : index
    %c0_3 = arith.constant 0 : index
    %5 = vector.load %arg8[%c0_2, %c0_3] : memref<8x128xf32, #tpu.memory_space<vmem>>, vector<8x128xf32>
    %c0_4 = arith.constant 0 : index
    %c0_5 = arith.constant 0 : index
    %6 = vector.load %arg3[%c0_4, %c0_5] : memref<1024x128xbf16, #tpu.memory_space<vmem>>, vector<1024x128xbf16>
    %cst = arith.constant dense<0.000000e+00> : vector<8x128xf32>
    %7 = tpu.matmul %4, %6, %cst {dimension_numbers = #tpu.dot_dimension_numbers<[1], [0], [0], [1], [0, 0, 1, 1], [], []>} : vector<8x1024xbf16>, vector<1024x128xbf16>, vector<8x128xf32> -> vector<8x128xf32>
    %8 = arith.addf %5, %7 : vector<8x128xf32>
    %c0_6 = arith.constant 0 : index
    %c0_7 = arith.constant 0 : index
    %9 = vector.load %arg8[%c0_6, %c0_7] : memref<8x128xf32, #tpu.memory_space<vmem>>, vector<8x128xf32>
    tpu.vector_store %arg8[%c0_6, %c0_7], %8 {strides = array<i32>} : memref<8x128xf32, #tpu.memory_space<vmem>>, vector<8x128xf32>,
    %c0_i32_8 = arith.constant 0 : i32
    %10 = arith.cmpi eq, %arg1, %c0_i32_8 : i32
    %11 = arith.extui %10 : i1 to i32
    %c0_i32_9 = arith.constant 0 : i32
    %12 = arith.cmpi ne, %11, %c0_i32_9 : i32
    scf.if %12 {
      %c0_10 = arith.constant 0 : index
      %c0_11 = arith.constant 0 : index
      %13 = vector.load %arg8[%c0_10, %c0_11] : memref<8x128xf32, #tpu.memory_space<vmem>>, vector<8x128xf32>
      %c0_12 = arith.constant 0 : index
      %c0_13 = arith.constant 0 : index
      %14 = vector.load %arg4[%c0_12, %c0_13] : memref<1x128xf32, #tpu.memory_space<vmem>>, vector<1x128xf32>
      %15 = vector.broadcast %14 : vector<1x128xf32> to vector<8x128xf32>
      %16 = arith.addf %13, %15 : vector<8x128xf32>
      %cst_14 = arith.constant 0.000000e+00 : f32
      %17 = vector.broadcast %cst_14 : f32 to vector<8x128xf32>
      %18 = arith.maximumf %16, %17 : vector<8x128xf32>
      %19 = arith.truncf %18 : vector<8x128xf32> to vector<8x128xbf16>
      %c0_15 = arith.constant 0 : index
      %c0_16 = arith.constant 0 : index
      %20 = vector.load %arg5[%c0_15, %c0_16] : memref<128x128xbf16, #tpu.memory_space<vmem>>, vector<128x128xbf16>
      %cst_17 = arith.constant dense<0.000000e+00> : vector<8x128xf32>
      %21 = tpu.matmul %19, %20, %cst_17 {dimension_numbers = #tpu.dot_dimension_numbers<[1], [0], [0], [1], [0, 0, 1, 1], [], []>} : vector<8x128xbf16>, vector<128x128xbf16>, vector<8x128xf32> -> vector<8x128xf32>
      %c0_18 = arith.constant 0 : index
      %c0_19 = arith.constant 0 : index
      %22 = vector.load %arg6[%c0_18, %c0_19] : memref<1x128xf32, #tpu.memory_space<vmem>>, vector<1x128xf32>
      %23 = vector.broadcast %22 : vector<1x128xf32> to vector<8x128xf32>
      %24 = arith.addf %21, %23 : vector<8x128xf32>
      %cst_20 = arith.constant dense<0xFF800000> : vector<8xf32>
      %25 = vector.multi_reduction <maximumf>, %24, %cst_20 [1] : vector<8x128xf32> to vector<8xf32>
      %26 = vector.shape_cast %25 : vector<8xf32> to vector<8x1xf32>
      %27 = vector.broadcast %26 : vector<8x1xf32> to vector<8x128xf32>
      %28 = arith.subf %24, %27 : vector<8x128xf32>
      %29 = math.exp %28 : vector<8x128xf32>
      %cst_21 = arith.constant dense<0.000000e+00> : vector<8xf32>
      %30 = vector.multi_reduction <add>, %29, %cst_21 [1] : vector<8x128xf32> to vector<8xf32>
      %31 = vector.shape_cast %30 : vector<8xf32> to vector<8x1xf32>
      %32 = math.log %31 : vector<8x1xf32>
      %33 = vector.broadcast %32 : vector<8x1xf32> to vector<8x128xf32>
      %34 = arith.subf %28, %33 : vector<8x128xf32>
      %c0_22 = arith.constant 0 : index
      %c0_23 = arith.constant 0 : index
      %35 = vector.load %arg7[%c0_22, %c0_23] : memref<8x128xf32, #tpu.memory_space<vmem>>, vector<8x128xf32>
      tpu.vector_store %arg7[%c0_22, %c0_23], %34 {strides = array<i32>} : memref<8x128xf32, #tpu.memory_space<vmem>>, vector<8x128xf32>,
    } else {
    }
    return
  }
  func.func @transform_0(%arg0: i32, %arg1: i32) -> (i32, i32) {
    %c0_i32 = arith.constant 0 : i32
    return %arg0, %arg1 : i32, i32
  }
  func.func @transform_1(%arg0: i32, %arg1: i32) -> (i32, i32) {
    %c0_i32 = arith.constant 0 : i32
    %c0_i32_0 = arith.constant 0 : i32
    return %arg1, %c0_i32 : i32, i32
  }
  func.func @transform_2(%arg0: i32, %arg1: i32) -> (i32, i32) {
    %c0_i32 = arith.constant 0 : i32
    %c0_i32_0 = arith.constant 0 : i32
    %c0_i32_1 = arith.constant 0 : i32
    return %c0_i32, %c0_i32_0 : i32, i32
  }
  func.func @transform_3(%arg0: i32, %arg1: i32) -> (i32, i32) {
    %c0_i32 = arith.constant 0 : i32
    %c0_i32_0 = arith.constant 0 : i32
    %c0_i32_1 = arith.constant 0 : i32
    return %c0_i32, %c0_i32_0 : i32, i32
  }
  func.func @transform_4(%arg0: i32, %arg1: i32) -> (i32, i32) {
    %c0_i32 = arith.constant 0 : i32
    %c0_i32_0 = arith.constant 0 : i32
    %c0_i32_1 = arith.constant 0 : i32
    return %c0_i32, %c0_i32_0 : i32, i32
  }
  func.func @transform_5(%arg0: i32, %arg1: i32) -> (i32, i32) {
    %c0_i32 = arith.constant 0 : i32
    %c0_i32_0 = arith.constant 0 : i32
    return %arg0, %c0_i32 : i32, i32
  }
}

</mosaic_0001>

<bundles_post_ra>
// kernel: tpu_custom_call.1
= control target key start
LH: loop header
LB: loop body
LE: loop exit
PB: predicated region body
PF: predicated region fallthrough
CT: control target
= control target key end

     0   :  { %10 = vsyncpa [#allocation4], 0  ;;  %s2097_s0 = inlined_call_operand.hbm [shape: f32[16,1024], index: 0, kind: input, shape index: {}]   ;;  %s2098_s1 = inlined_call_operand.hbm [shape: bf16[1024,128], index: 1, kind: input, shape index: {}]   ;;  %s2099_s2 = inlined_call_operand.vmem [shape: f32[1,128], index: 2, kind: input, shape index: {}]   ;;  %s2100_s3 = inlined_call_operand.hbm [shape: bf16[128,128], index: 3, kind: input, shape index: {}]   ;;  %s2101_s4 = inlined_call_operand.vmem [shape: f32[1,128], index: 4, kind: input, shape index: {}]   ;;  %s2102_s5 = inlined_call_operand.hbm [shape: f32[16,128], index: 5, kind: output, shape index: {}]  }
   0x1   :  { %12 = vsyncpa [#allocation4 + $0x1], 0 }
   0x2   :  { %13 = vsyncpa [#allocation7], 0 }
   0x3   :  { %14 = vsyncpa [#allocation5], 0 }
   0x4   :  { %16 = vsyncpa [#allocation5 + $0x1], 0  ;;  %s1830_s18 = smov 0   ;;  %s1832_s19 = smov 0  }
   0x5   :  { %s1834_s20 = smov 0   ;;  %s1836_s21 = smov 0  }
   0x6   :  { %s1838_s22 = smov 0   ;;  %s1840_s23 = smov 0  }
   0x7 LB: > { %s1245_s24 = sadd.s32 4294967295, %s1790_s23   ;;  %s1246_s25 = sadd.s32 4294967294, %s1790_s23   ;;  %s1790_s23 = sphi %s1840_s23, %s22_s23   ;;  %s1786_s22 = sphi %s1838_s22, %s2124_s22   ;;  %s1782_s21 = sphi %s1836_s21, %s2123_s21   ;;  %s1778_s20 = sphi %s1834_s20, %s2122_s20   ;;  %s1774_s19 = sphi %s1832_s19, %s2121_s19   ;;  %s1770_s18 = sphi %s1830_s18, %s2120_s18  }
   0x8   : > { %p56_p0 = scmp.ne.s32.totalorder %s1774_s19, %s1770_s18  ;;  %p1864_p1 = scmp.eq.s32.totalorder %s1245_s24, 0 }
   0x9   : > { %p1868_p2 = scmp.eq.s32.totalorder %s1245_s24, 1  ;;  %p175_p3 = scmp.eq.s32.totalorder %s1246_s25, 1 }
   0xa   : > { %s2107_s26 = scalar_select %p1864_p1, 1, 0 }
   0xb   : > { %p1874_p4 = por %p1864_p1, %p56_p0  ;;  %p1247_p5 = scmp.ge.s32.totalorder %s1790_s23, 1 }
   0xc   : > { %p1879_p6 = por %p175_p3, %p56_p0  ;;  %p182_p7 = scmp.lt.s32.totalorder %s1790_s23, 3 }
   0xd   : > { %s2109_s28 = scalar_select %p1874_p4, 1, 0 }
   0xe   : > { %s2110_s29 = scalar_select %p1879_p6, 1, 0 }
   0xf   : > { %p1884_p8 = pnand %p1247_p5, %p182_p7  ;;  %s1792_s6 = smov [#allocation6]  }
  0x10   : > { %s197_s7 = sshll.u32 %s1792_s6, 4  ;;  %s1793_s9 = smov [#allocation8]   ;;  %s1888_s7 = int_to_ptr.vmem [resolvable:$true] %s197_s7 }
  0x11   : > { %p1467_p9 = pneg %p1884_p8  ;;  %s213_s10 = sshll.u32 %s1793_s9, 4  ;;  %s1899_s10 = int_to_ptr.vmem [resolvable:$true] %s213_s10 }
  0x12   : > { %s1618_s13 = scalar_lea.hbm %s2098_s1, 8192 }
  0x13   : > { %p1895_p11 = pnand %p1467_p9, %p1864_p1  ;;  %p1619_p12 = scmp.ne.s32.totalorder %s2098_s1, %s1618_s13 }
  0x14   : > { %p1625_p5 = scmp.lt.u32.totalorder %s1618_s13, %s2098_s1 }
  0x15   : > { %p1620_p13 = pneg %p1895_p11 }
  0x17   : > { %p1621_p0 = pnand %p1620_p13, %p1619_p12 }
  0x19   : > { %p1622_p3 = pneg %p1621_p0 }
  0x1b   : > { %p1627_p7 = pnand %p1625_p5, %p1622_p3 }
  0x1d   : > { %1630 = shalt.err (!%p1627_p7)
}
  0x1e   : > { %s1631_s24 = scalar_lea.vmem %s1888_s7, 8192  ;;  %p1639_p1 = scmp.lt.s32.totalorder %s1888_s7, %s1888_s7 }
  0x1f   : > { %p1632_p9 = scmp.ne.s32.totalorder %s1888_s7, %s1631_s24  ;;  %p1640_p12 = scmp.lt.s32.totalorder %s1631_s24, %s1631_s24 }
  0x21   : > { %p1634_p10 = pnand %p1632_p9, %p1620_p13  ;;  %p1641_p0 = por %p1640_p12, %p1639_p1 }
  0x23   : > { %p1635_p6 = pneg %p1634_p10 }
  0x25   : > { %p1642_p4 = pnand %p1641_p0, %p1635_p6 }
  0x27   : > { %1645 = shalt.err (!%p1642_p4)
}
  0x28   : > { %s1794_s25 = smov 64   ;;  %s1795_s6 = smov 4  }
  0x29   : > { %1470 = dma.hbm_to_vmem [thread:$0]  (!%p1895_p11), %s2098_s1, 8192, %s1888_s7, [#allocation7], %s1794_s25, %s1794_s25, %s1795_s6  }
  0x2a   : > { %s1646_s14 = scalar_lea.hbm %s2100_s3, 1024 }
  0x2b   : > { %p1647_p1 = scmp.ne.s32.totalorder %s2100_s3, %s1646_s14  ;;  %p1653_p10 = scmp.lt.u32.totalorder %s1646_s14, %s2100_s3 }
  0x2d   : > { %p1649_p4 = pnand %p1647_p1, %p1620_p13 }
  0x2f   : > { %p1650_p6 = pneg %p1649_p4 }
  0x31   : > { %p1655_p3 = pnand %p1653_p10, %p1650_p6 }
  0x33   : > { %1658 = shalt.err (!%p1655_p3)
}
  0x34   : > { %s1659_s7 = scalar_lea.vmem %s1899_s10, 1024  ;;  %p1667_p12 = scmp.lt.s32.totalorder %s1899_s10, %s1899_s10 }
  0x35   : > { %p1660_p5 = scmp.ne.s32.totalorder %s1899_s10, %s1659_s7  ;;  %p1668_p0 = scmp.lt.s32.totalorder %s1659_s7, %s1659_s7 }
  0x37   : > { %p1662_p7 = pnand %p1660_p5, %p1620_p13  ;;  %p1669_p1 = por %p1668_p0, %p1667_p12 }
  0x39   : > { %p1663_p9 = pneg %p1662_p7 }
  0x3b   : > { %p1670_p4 = pnand %p1669_p1, %p1663_p9 }
  0x3d   : > { %1673 = shalt.err (!%p1670_p4)
}
  0x3e   : > { %1473 = dma.hbm_to_vmem [thread:$0]  (!%p1895_p11), %s2100_s3, 1024, %s1899_s10, [#allocation7], %s1794_s25, %s1794_s25, %s1795_s6  }
  0x3f   : > { %s34_s12 = sadd.s32 1, %s1786_s22  ;;  %s43_s13 = sadd.s32 1, %s1778_s20 }
  0x40   : > { %p36_p13 = scmp.ge.s32.totalorder %s34_s12, 2  ;;  %p50_p6 = scmp.ne.s32.totalorder %s1778_s20, %s1774_s19 }
  0x41   : > { %p51_p10 = scmp.eq.s32.totalorder %s1790_s23, 0  ;;  %p1484_p3 = scmp.lt.s32.totalorder %s1790_s23, 2 }
  0x42   : > { %s2126_s12 = smov (%p36_p13, %s34_s12), 0  ;;  %p1963_p7 = por %p1868_p2, %p50_p6 }
  0x43   : > { %p52_p5 = por %p51_p10, %p50_p6  ;;  %s38_s14 = ssub.s32 %s1786_s22, %s2126_s12 }
  0x44   : > { %s2113_s8 = scalar_select %p1963_p7, 1, 0 }
  0x45   : > { %s230_s15 = sand.u32 1, %s1778_s20   ;;  %p41_p9 = scmp.eq.s32.totalorder %s38_s14, 0 }
  0x46   : > { %s1251_s10 = sshll.u32 %s230_s15, 6  ;;  %s1337_s25 = sshll.u32 %s1786_s22, 10 }
  0x47   : > { %s1972_s6 = scalar_select %p41_p9, %s1778_s20, %s43_s13  }
  0x48   : > { %s1977_s24 = scalar_lea.hbm %s2097_s0, %s1337_s25  ;;  %s234_s27 = scalar_lea.vmem [#allocation3], %s1251_s10 }
  0x49   : > { %s244_s7 = sshll.u32 %s234_s27, 4  ;;  %p1981_p2 = pnand %p1484_p3, %p52_p5  ;;  %s1985_s7 = int_to_ptr.vmem [resolvable:$true] %s244_s7 }
  0x4a   : > { %s231_s11 = scalar_lea.sflag [#allocation4], %s230_s15  ;;  %s1674_s13 = scalar_lea.hbm %s1977_s24, 1024 }
  0x4b   : > { %p1675_p11 = scmp.ne.s32.totalorder %s1977_s24, %s1674_s13  ;;  %p1676_p12 = pneg %p1981_p2 }
  0x4c   : > { %s1679_s25 = scalar_lea.hbm %s2097_s0, 2048  ;;  %p1680_p4 = scmp.lt.u32.totalorder %s1977_s24, %s2097_s0 }
  0x4d   : > { %p1677_p0 = pnand %p1676_p12, %p1675_p11  ;;  %p1681_p13 = scmp.lt.u32.totalorder %s1679_s25, %s1674_s13 }
  0x4e   : > { %p1683_p10 = scmp.lt.u32.totalorder %s1674_s13, %s1977_s24 }
  0x4f   : > { %p1678_p1 = pneg %p1677_p0  ;;  %p1682_p6 = por %p1681_p13, %p1680_p4 }
  0x51   : > { %p1684_p3 = por %p1683_p10, %p1682_p6 }
  0x53   : > { %p1685_p5 = pnand %p1684_p3, %p1678_p1 }
  0x55   : > { %1688 = shalt.err (!%p1685_p5)
}
  0x56   : > { %s1689_s15 = scalar_lea.vmem %s1985_s7, 1024  ;;  %s1796_s27 = smov [#allocation3]  }
  0x57   : > { %p1690_p9 = scmp.ne.s32.totalorder %s1985_s7, %s1689_s15  ;;  %s1694_s14 = sshll.u32 %s1796_s27, 4  ;;  %s1695_s14 = int_to_ptr.vmem [resolvable:$false] %s1694_s14 }
  0x58   : > { %s1696_s10 = scalar_lea.vmem %s1695_s14, 2048  ;;  %p1697_p7 = scmp.lt.s32.totalorder %s1985_s7, %s1695_s14 }
  0x59   : > { %p1692_p11 = pnand %p1690_p9, %p1676_p12  ;;  %p1698_p4 = scmp.lt.s32.totalorder %s1696_s10, %s1689_s15 }
  0x5b   : > { %p1693_p0 = pneg %p1692_p11  ;;  %p1699_p13 = por %p1698_p4, %p1697_p7 }
  0x5d   : > { %p1700_p6 = pnand %p1699_p13, %p1693_p0 }
  0x5f   : > { %1703 = shalt.err (!%p1700_p6)
}
  0x60   : > { %1477 = dma.hbm_to_vmem [thread:$0]  (!%p1981_p2), %s1977_s24, 1024, %s1985_s7, %s231_s11  }
  0x61   : > { %253 = sbr.rel (%p1884_p8) target bundleno = 941 (0x3ad), region = 40  ;;  %s2015_s13 = sand.u32 (!%p1884_p8), 1, %s1774_s19  }
  0x62   : > { %s1255_s25 = sshll.u32 (!%p1884_p8), %s2015_s13, 6  ;;  %s256_s16 = scalar_lea.sflag (!%p1884_p8), [#allocation4], %s2015_s13 }
  0x63   : > { %s2019_s17 = scalar_lea.vmem (!%p1884_p8), [#allocation3], %s1255_s25  ;;  %p2115_p7 = scmp.ne.s32.totalorder (!%p1884_p8), %s2109_s28, 0 }
  0x68   : > { %1757 = dma.done.wait (%p2115_p7), %s256_s16, 1024  }
  0x69   : > { %1759 = vsyncadd (%p2115_p7), %s256_s16, 4294966272  ;;  %p2116_p2 = scmp.ne.s32.totalorder %s2107_s26, 0 }
  0x6b   : > { %1761 = dma.done.wait (%p2116_p2), [#allocation7], 9216  }
  0x6c   : > { %1763 = vsyncadd (%p2116_p2), [#allocation7], 4294958080  ;;  %v1542_v0 = vld [vmem:[#allocation6 + $0x40] sm:$0xff]   ;;  %v1546_v4 = vld [vmem:[#allocation6 + $0x48] sm:$0xff]   ;;  %vm1798_vm0 = vmmov 0   ;;  %s1258_s7 = sshll.u32 %s2015_s13, 3 }
  0x6d   : > { %v1543_v1 = vld [vmem:[#allocation6 + $0xc0] sm:$0xff]   ;;  %1338 = vmatprep.subr.bf16.mxu0 %v1542_v0  ;;  %v1547_v5 = vld [vmem:[#allocation6 + $0xc8] sm:$0xff]   ;;  %v1550_v8 = vld [vmem:[#allocation6 + $0x50] sm:$0xff]   ;;  %s1334_s9 = sshll.u32 %s1782_s21, 7  ;;  %s293_s11 = scalar_lea.vmem [#allocation9], %s1258_s7 }
  0x6e   : > { %v1544_v2 = vld [vmem:[#allocation6] sm:$0xff]   ;;  %1360 = vmatprep.subr.bf16.mxu1 %v1543_v1  ;;  %v1548_v6 = vld [vmem:[#allocation6 + $0x8] sm:$0xff]   ;;  %v1551_v9 = vld [vmem:[#allocation6 + $0xd0] sm:$0xff]   ;;  %s1143_s15 = sshll.u32 %s293_s11, 4  ;;  %s2048_s10 = scalar_lea.hbm %s2102_s5, %s1334_s9  ;;  %s2050_s15 = int_to_ptr.vmem [resolvable:$true] %s1143_s15 }
  0x6f   : > { %v1545_v3 = vld [vmem:[#allocation6 + $0x80] sm:$0xff]   ;;  %1339 = vmatpush3.bf16.msra.mxu0 %v1544_v2  ;;  %v1549_v7 = vld [vmem:[#allocation6 + $0x88] sm:$0xff]   ;;  %v1552_v10 = vld [vmem:[#allocation6 + $0x10] sm:$0xff]   ;;  %s1130_s25 = scalar_lea.sflag [#allocation5], %s2015_s13  ;;  %s1704_s16 = scalar_lea.vmem %s2050_s15, 128 }
  0x70   : > { %1361 = vmatpush3.bf16.msra.mxu1 %v1545_v3  ;;  %1340 = vmatprep.subr.bf16.mxu0 %v1546_v4  ;;  %v1553_v11 = vld [vmem:[#allocation6 + $0x90] sm:$0xff]   ;;  %v1554_v12 = vld [vmem:[#allocation6 + $0x58] sm:$0xff]   ;;  %v1558_v16 = vld [vmem:[#allocation6 + $0x60] sm:$0xff]   ;;  %p1705_p8 = scmp.ne.s32.totalorder %s2050_s15, %s1704_s16  ;;  %p2117_p12 = scmp.ne.s32.totalorder %s2113_s8, 0 }
  0x71   : > { %1362 = vmatprep.subr.bf16.mxu1 %v1547_v5  ;;  %v1555_v13 = vld [vmem:[#allocation6 + $0xd8] sm:$0xff]   ;;  %v1559_v17 = vld [vmem:[#allocation6 + $0xe0] sm:$0xff]   ;;  %v1562_v20 = vld [vmem:[#allocation6 + $0x68] sm:$0xff]   ;;  %s1799_s21 = smov [#allocation9]  }
  0x72   : > { %v1556_v14 = vld [vmem:[#allocation6 + $0x18] sm:$0xff]   ;;  %v1560_v18 = vld [vmem:[#allocation6 + $0x20] sm:$0xff]   ;;  %v1563_v21 = vld [vmem:[#allocation6 + $0xe8] sm:$0xff]   ;;  %p1706_p1 = pnand %p1705_p8, %p2117_p12 }
  0x73   : > { %1341 = vmatpush3.bf16.msra.mxu0 %v1548_v6  ;;  %v1557_v15 = vld [vmem:[#allocation6 + $0x98] sm:$0xff]   ;;  %v1561_v19 = vld [vmem:[#allocation6 + $0xa0] sm:$0xff]   ;;  %v1564_v22 = vld [vmem:[#allocation6 + $0x28] sm:$0xff]  }
  0x74   : > { %1363 = vmatpush3.bf16.msra.mxu1 %v1549_v7  ;;  %1342 = vmatprep.subr.bf16.mxu0 %v1550_v8  ;;  %v1565_v23 = vld [vmem:[#allocation6 + $0xa8] sm:$0xff]   ;;  %v1566_v24 = vld [vmem:[#allocation6 + $0x70] sm:$0xff]   ;;  %v1570_v28 = vld [vmem:[#allocation6 + $0x78] sm:$0xff]   ;;  %p1707_p10 = pneg %p1706_p1 }
  0x75   : > { %1364 = vmatprep.subr.bf16.mxu1 %v1551_v9  ;;  %v1567_v25 = vld [vmem:[#allocation6 + $0xf0] sm:$0xff]   ;;  %v1571_v29 = vld [vmem:[#allocation6 + $0xf8] sm:$0xff]   ;;  %v303_v32 = vld [vmem:[%s2019_s17 + $0x8] sm:$0xff] }
  0x76   : > { %v1568_v26 = vld [vmem:[#allocation6 + $0x30] sm:$0xff]   ;;  %v1572_v30 = vld [vmem:[#allocation6 + $0x38] sm:$0xff]   ;;  %v302_v34 = vld [vmem:[%s2019_s17] sm:$0xff]  ;;  %v311_v35 = vpack.c.bf16 %v303_v32, %v303_v32 }
  0x77   : > { %1343 = vmatpush3.bf16.msra.mxu0 %v1552_v10  ;;  %v1569_v27 = vld [vmem:[#allocation6 + $0xb0] sm:$0xff]   ;;  %v1573_v31 = vld [vmem:[#allocation6 + $0xb8] sm:$0xff]   ;;  %v310_v37 = vpack.c.bf16 %v302_v34, %v302_v34  ;;  %v1574_v40 = vld [vmem:[#allocation6 + $0x140] sm:$0xff]  }
  0x78   : > { %1365 = vmatpush3.bf16.msra.mxu1 %v1553_v11  ;;  %1344 = vmatprep.subr.bf16.mxu0 %v1554_v12  ;;  %v305_v33 = vld [vmem:[%s2019_s17 + $0x18] sm:$0xff]  ;;  %v304_v38 = vld [vmem:[%s2019_s17 + $0x10] sm:$0xff]  ;;  %v1575_v41 = vld [vmem:[#allocation6 + $0x1c0] sm:$0xff]  }
  0x79   : > { %1366 = vmatprep.subr.bf16.mxu1 %v1555_v13  ;;  %v313_v36 = vpack.c.bf16 %v305_v33, %v305_v33  ;;  %v312_v39 = vpack.c.bf16 %v304_v38, %v304_v38  ;;  %863 = vmatprep.mubr.bf16.mxu0 %v311_v35  ;;  %v1576_v42 = vld [vmem:[#allocation6 + $0x100] sm:$0xff]   ;;  %v1578_v44 = vld [vmem:[#allocation6 + $0x148] sm:$0xff]   ;;  %v1582_v48 = vld [vmem:[#allocation6 + $0x150] sm:$0xff]  }
  0x7a   : > { %v1577_v43 = vld [vmem:[#allocation6 + $0x180] sm:$0xff]   ;;  %v1579_v45 = vld [vmem:[#allocation6 + $0x1c8] sm:$0xff]   ;;  %v1583_v49 = vld [vmem:[#allocation6 + $0x1d0] sm:$0xff]  }
  0x7b   : > { %1345 = vmatpush3.bf16.msra.mxu0 %v1556_v14  ;;  %903 = vmatprep.mubr.bf16.mxu1 %v313_v36  ;;  %v1580_v46 = vld [vmem:[#allocation6 + $0x108] sm:$0xff]   ;;  %v1584_v50 = vld [vmem:[#allocation6 + $0x110] sm:$0xff]   ;;  %v1586_v52 = vld [vmem:[#allocation6 + $0x158] sm:$0xff]  }
  0x7c   : > { %1367 = vmatpush3.bf16.msra.mxu1 %v1557_v15  ;;  %1346 = vmatprep.subr.bf16.mxu0 %v1558_v16  ;;  %v1581_v47 = vld [vmem:[#allocation6 + $0x188] sm:$0xff]   ;;  %v1585_v51 = vld [vmem:[#allocation6 + $0x190] sm:$0xff]   ;;  %v1587_v53 = vld [vmem:[#allocation6 + $0x1d8] sm:$0xff]  }
  0x7d   : > { %1368 = vmatprep.subr.bf16.mxu1 %v1559_v17  ;;  %v1588_v54 = vld [vmem:[#allocation6 + $0x118] sm:$0xff]   ;;  %v1590_v56 = vld [vmem:[#allocation6 + $0x160] sm:$0xff]   ;;  %v1594_v60 = vld [vmem:[#allocation6 + $0x168] sm:$0xff]   ;;  %v1797_v17 = vmov 0.0  }
  0x7e   : > { %v1589_v55 = vld [vmem:[#allocation6 + $0x198] sm:$0xff]   ;;  %v1591_v57 = vld [vmem:[#allocation6 + $0x1e0] sm:$0xff]   ;;  %v1595_v61 = vld [vmem:[#allocation6 + $0x1e8] sm:$0xff]  }
  0x7f   : > { %1347 = vmatpush3.bf16.msra.mxu0 %v1560_v18  ;;  %v1592_v58 = vld [vmem:[#allocation6 + $0x120] sm:$0xff]   ;;  %v1596_v62 = vld [vmem:[#allocation6 + $0x128] sm:$0xff]   ;;  %v1598_v0 = vld [vmem:[#allocation6 + $0x170] sm:$0xff]  }
  0x80   : > { %1369 = vmatpush3.bf16.msra.mxu1 %v1561_v19  ;;  %1348 = vmatprep.subr.bf16.mxu0 %v1562_v20  ;;  %v1593_v59 = vld [vmem:[#allocation6 + $0x1a0] sm:$0xff]   ;;  %v1597_v63 = vld [vmem:[#allocation6 + $0x1a8] sm:$0xff]   ;;  %v1599_v1 = vld [vmem:[#allocation6 + $0x1f0] sm:$0xff]  }
  0x81   : > { %1370 = vmatprep.subr.bf16.mxu1 %v1563_v21  ;;  %v1600_v2 = vld [vmem:[#allocation6 + $0x130] sm:$0xff]   ;;  %v1602_v4 = vld [vmem:[#allocation6 + $0x178] sm:$0xff]   ;;  %v307_v8 = vld [vmem:[%s2019_s17 + $0x28] sm:$0xff] }
  0x82   : > { %v1601_v3 = vld [vmem:[#allocation6 + $0x1b0] sm:$0xff]   ;;  %v1603_v5 = vld [vmem:[#allocation6 + $0x1f8] sm:$0xff]   ;;  %v315_v10 = vpack.c.bf16 %v307_v8, %v307_v8  ;;  %v306_v12 = vld [vmem:[%s2019_s17 + $0x20] sm:$0xff] }
  0x83   : > { %1349 = vmatpush3.bf16.msra.mxu0 %v1564_v22  ;;  %v1604_v6 = vld [vmem:[#allocation6 + $0x138] sm:$0xff]   ;;  %v308_v13 = vld [vmem:[%s2019_s17 + $0x30] sm:$0xff]  ;;  %v314_v14 = vpack.c.bf16 %v306_v12, %v306_v12  ;;  %v1606_v16 = vld [vmem:[#allocation8] sm:$0xff]  }
  0x84   : > { %1371 = vmatpush3.bf16.msra.mxu1 %v1565_v23  ;;  %1350 = vmatprep.subr.bf16.mxu0 %v1566_v24  ;;  %v1605_v7 = vld [vmem:[#allocation6 + $0x1b8] sm:$0xff]   ;;  %v316_v15 = vpack.c.bf16 %v308_v13, %v308_v13  ;;  %v1607_v18 = vld [vmem:[#allocation8 + $0x8] sm:$0xff]   ;;  %v1608_v19 = vld [vmem:[#allocation8 + $0x10] sm:$0xff]  }
  0x85   : > { %1372 = vmatprep.subr.bf16.mxu1 %v1567_v25  ;;  %v309_v9 = vld [vmem:[%s2019_s17 + $0x38] sm:$0xff]  ;;  %v1610_v21 = vld [vmem:[#allocation8 + $0x20] sm:$0xff]   ;;  %v1611_v22 = vld [vmem:[#allocation8 + $0x28] sm:$0xff]   ;;  %s1708_s17 = sshll.u32 %s1799_s21, 4  ;;  %s1709_s17 = int_to_ptr.vmem [resolvable:$false] %s1708_s17 }
  0x86   : > { %v317_v11 = vpack.c.bf16 %v309_v9, %v309_v9  ;;  %v1609_v20 = vld [vmem:[#allocation8 + $0x18] sm:$0xff]   ;;  %v1612_v23 = vld [vmem:[#allocation8 + $0x30] sm:$0xff]   ;;  %s1710_s26 = scalar_lea.vmem %s1709_s17, 256  ;;  %p1711_p3 = scmp.lt.s32.totalorder %s2050_s15, %s1709_s17 }
  0x87   : > { %1351 = vmatpush3.bf16.msra.mxu0 %v1568_v26  ;;  %v1613_v24 = vld [vmem:[#allocation8 + $0x38] sm:$0xff]   ;;  %p1712_p5 = scmp.lt.s32.totalorder %s1710_s26, %s1704_s16 }
  0x88   : > { %1373 = vmatpush3.bf16.msra.mxu1 %v1569_v27  ;;  %1352 = vmatprep.subr.bf16.mxu0 %v1570_v28 }
  0x89   : > { %1374 = vmatprep.subr.bf16.mxu1 %v1571_v29  ;;  %p1713_p9 = por %p1712_p5, %p1711_p3 }
  0x8b   : > { %1353 = vmatpush3.bf16.msra.mxu0 %v1572_v30  ;;  %p1714_p11 = pnand %p1713_p9, %p1707_p10 }
  0x8c   : > { %1375 = vmatpush3.bf16.msra.mxu1 %v1573_v31  ;;  %1382 = vmatprep.subr.bf16.mxu0 %v1574_v40 }
  0x8d   : > { %1404 = vmatprep.subr.bf16.mxu1 %v1575_v41 }
  0x8e   : > { %864 = vmatmul.mubr.bf16.vlgmr.msra.gmra.mrb[0].mxu0 %v310_v37 }
  0x8f   : > { %904 = vmatmul.mubr.bf16.vlgmr.msra.gmra.mrb[0].mxu1 %v312_v39  ;;  %1383 = vmatpush3.bf16.msra.mxu0 %v1576_v42 }
  0x90   : > { %1405 = vmatpush3.bf16.msra.mxu1 %v1577_v43  ;;  %1384 = vmatprep.subr.bf16.mxu0 %v1578_v44 }
  0x91   : > { %1406 = vmatprep.subr.bf16.mxu1 %v1579_v45  ;;  %943 = vmatprep.mubr.bf16.mxu0 %v315_v10 }
  0x92   : > { %983 = vmatprep.mubr.bf16.mxu1 %v317_v11 }
  0x93   : > { %1385 = vmatpush3.bf16.msra.mxu0 %v1580_v46 }
  0x94   : > { %1407 = vmatpush3.bf16.msra.mxu1 %v1581_v47  ;;  %1386 = vmatprep.subr.bf16.mxu0 %v1582_v48  ;;  %v1323_v47 = vld [vmem:[%s2099_s2] ss:$0 sm:$0xff] }
  0x95   : > { %1408 = vmatprep.subr.bf16.mxu1 %v1583_v49 }
  0x97   : > { %1387 = vmatpush3.bf16.msra.mxu0 %v1584_v50 }
  0x98   : > { %1409 = vmatpush3.bf16.msra.mxu1 %v1585_v51  ;;  %1388 = vmatprep.subr.bf16.mxu0 %v1586_v52  ;;  %v1324_v52 = vld [vmem:[%s2101_s4] ss:$0 sm:$0xff] }
  0x99   : > { %1410 = vmatprep.subr.bf16.mxu1 %v1587_v53 }
  0x9b   : > { %1389 = vmatpush3.bf16.msra.mxu0 %v1588_v54 }
  0x9c   : > { %1411 = vmatpush3.bf16.msra.mxu1 %v1589_v55  ;;  %1390 = vmatprep.subr.bf16.mxu0 %v1590_v56 }
  0x9d   : > { %1412 = vmatprep.subr.bf16.mxu1 %v1591_v57 }
  0x9f   : > { %1391 = vmatpush3.bf16.msra.mxu0 %v1592_v58 }
  0xa0   : > { %1413 = vmatpush3.bf16.msra.mxu1 %v1593_v59  ;;  %1392 = vmatprep.subr.bf16.mxu0 %v1594_v60 }
  0xa1   : > { %1414 = vmatprep.subr.bf16.mxu1 %v1595_v61 }
  0xa3   : > { %1393 = vmatpush3.bf16.msra.mxu0 %v1596_v62 }
  0xa4   : > { %1415 = vmatpush3.bf16.msra.mxu1 %v1597_v63  ;;  %1394 = vmatprep.subr.bf16.mxu0 %v1598_v0 }
  0xa5   : > { %1416 = vmatprep.subr.bf16.mxu1 %v1599_v1 }
  0xa7   : > { %1395 = vmatpush3.bf16.msra.mxu0 %v1600_v2 }
  0xa8   : > { %1417 = vmatpush3.bf16.msra.mxu1 %v1601_v3  ;;  %1396 = vmatprep.subr.bf16.mxu0 %v1602_v4 }
  0xa9   : > { %1418 = vmatprep.subr.bf16.mxu1 %v1603_v5 }
  0xab   : > { %1397 = vmatpush3.bf16.msra.mxu0 %v1604_v6 }
  0xac   : > { %1419 = vmatpush3.bf16.msra.mxu1 %v1605_v7  ;;  %1435 = vmatprep.subr.bf16.mxu0 %v1797_v17 }
  0xae   : > { %944 = vmatmul.mubr.bf16.vlgmr.msra.gmra.mrb[4].mxu0 %v314_v14 }
  0xaf   : > { %984 = vmatmul.mubr.bf16.vlgmr.msra.gmra.mrb[4].mxu1 %v316_v15  ;;  %1436 = vmatpush3.bf16.msra.mxu0 %v1606_v16 }
  0xb0   : > { %1437 = vmatprep.subr.bf16.mxu0 %v1797_v17  ;;  %1451 = vmatprep.mubr.msk.bf16.mxu0 %vm1798_vm0, %v1797_v17 }
  0xb3   : > { %1438 = vmatpush3.bf16.msra.mxu0 %v1607_v18 }
  0xb4   : > { %1439 = vmatprep.subr.bf16.mxu0 %v1797_v17 }
  0xb7   : > { %1440 = vmatpush3.bf16.msra.mxu0 %v1608_v19 }
  0xb8   : > { %1441 = vmatprep.subr.bf16.mxu0 %v1797_v17 }
  0xbb   : > { %1442 = vmatpush3.bf16.msra.mxu0 %v1609_v20 }
  0xbc   : > { %1443 = vmatprep.subr.bf16.mxu0 %v1797_v17 }
  0xbf   : > { %1444 = vmatpush3.bf16.msra.mxu0 %v1610_v21 }
  0xc0   : > { %1445 = vmatprep.subr.bf16.mxu0 %v1797_v17 }
  0xc3   : > { %1446 = vmatpush3.bf16.msra.mxu0 %v1611_v22 }
  0xc4   : > { %1447 = vmatprep.subr.bf16.mxu0 %v1797_v17 }
  0xc7   : > { %1448 = vmatpush3.bf16.msra.mxu0 %v1612_v23 }
  0xc8   : > { %1449 = vmatprep.subr.bf16.mxu0 %v1797_v17 }
  0xcb   : > { %1450 = vmatpush3.bf16.msra.mxu0 %v1613_v24 }
 0x161   : > { %v1354_v25 = vpop.f32.mrb[0].mxu0 }
 0x162   : > { %v1376_v26 = vpop.f32.mrb[0].mxu1  ;;  %v1355_v27 = vpop.f32.mrb[1].mxu0 }
 0x163   : > { %v1377_v28 = vpop.f32.mrb[1].mxu1  ;;  %v1356_v29 = vadd.f32 %v1355_v27, %v1354_v25  ;;  %v1357_v31 = vpop.f32.mrb[2].mxu0 }
 0x164   : > { %v1378_v30 = vadd.f32 %v1377_v28, %v1376_v26  ;;  %v1379_v32 = vpop.f32.mrb[2].mxu1  ;;  %v1358_v33 = vpop.f32.mrb[3].mxu0 }
 0x165   : > { %v1380_v34 = vpop.f32.mrb[3].mxu1 }
 0x166   : > { %v906_v35 = vadd.f32 %v1378_v30, %v1356_v29 }
 0x181   : > { %v1398_v36 = vpop.f32.mrb[4].mxu0 }
 0x182   : > { %v1420_v37 = vpop.f32.mrb[4].mxu1  ;;  %v1399_v38 = vpop.f32.mrb[5].mxu0 }
 0x183   : > { %v1400_v39 = vadd.f32 %v1399_v38, %v1398_v36  ;;  %v1421_v40 = vpop.f32.mrb[5].mxu1  ;;  %v1401_v41 = vpop.f32.mrb[6].mxu0 }
 0x184   : > { %v1422_v42 = vadd.f32 %v1421_v40, %v1420_v37  ;;  %v1423_v43 = vpop.f32.mrb[6].mxu1  ;;  %v1402_v44 = vpop.f32.mrb[7].mxu0 }
 0x185   : > { %v946_v45 = vadd.f32 %v1400_v39, %v906_v35  ;;  %v1424_v46 = vpop.f32.mrb[7].mxu1 }
 0x187   : > { %v986_v48 = vadd.f32 %v1422_v42, %v946_v45 }
 0x189   : > { %v1004_v49 = vadd.f32 %v1323_v47, %v986_v48 }
 0x18b   : > { %v1005_v50 = vmax.f32 %v1004_v49, 0.0 }
 0x18d   : > { %v1006_v51 = vpack.c.bf16 %v1005_v50, %v1005_v50 }
 0x18f   : > { %1452 = vmatmul.mubr.bf16.vlgmr.msra.gmra.mrb[8].mxu0 %v1006_v51 }
 0x262   : > { %v1112_v53 = vpop.f32.mrb[8].mxu0 }
 0x263   : > { %v1113_v54 = vadd.f32 %v1324_v52, %v1112_v53  ;;  %v1453_v55 = vpop.f32.mrb[9].mxu0 }
 0x264   : > { %v1115_v56 = vpop.f32.mrb[10].mxu0 }
 0x265   : > { %1118 = vmax.xlane.f32.xlu0 %v1113_v54  ;;  %v1454_v57 = vpop.f32.mrb[11].mxu0 }
 0x2f2   : > { %v1119_v58 = vpop.xlane.xlu0 %1118 }
 0x2f3   : > { %v1120_v59 = vsub.f32 %v1113_v54, %v1119_v58 }
 0x2f5   : > { %v1121_v60 = vmul.f32 1.442695, %v1120_v59 }
 0x2f7   : > { %1614 = vpow2.f32 %v1121_v60 }
 0x301   : > { %v1615_v61 = vpop.eup %1614 }
 0x302   : > { %1123 = vadd.xlane.f32.xlu0 %v1615_v61 }
 0x38f   : > { %v1124_v62 = vpop.xlane.xlu0 %1123 }
 0x390   : > { %1616 = vlog2.f32 %v1124_v62 }
 0x39a   : > { %v1617_v63 = vpop.eup %1616 }
 0x39b   : > { %v1126_v0 = vmul.f32 0.6931472, %v1617_v63 }
 0x39d   : > { %v1127_v1 = vsub.f32 %v1120_v59, %v1126_v0 }
 0x39f   : > { %1128 = vst [vmem:[%s293_s11] sm:$0xff] %v1127_v1 }
 0x3a0   : > { %1717 = shalt.err (!%p1714_p11)
}
 0x3a1   : > { %s1718_s13 = scalar_lea.hbm %s2048_s10, 128  ;;  %s1722_s24 = scalar_lea.hbm %s2102_s5, 256 }
 0x3a2   : > { %p1719_p0 = scmp.ne.s32.totalorder %s2048_s10, %s1718_s13  ;;  %p1723_p6 = scmp.lt.u32.totalorder %s2048_s10, %s2102_s5 }
 0x3a3   : > { %p1724_p7 = scmp.lt.u32.totalorder %s1722_s24, %s1718_s13  ;;  %p1726_p8 = scmp.lt.u32.totalorder %s1718_s13, %s2048_s10 }
 0x3a4   : > { %p1720_p4 = pnand %p1719_p0, %p2117_p12 }
 0x3a5   : > { %p1725_p2 = por %p1724_p7, %p1723_p6 }
 0x3a6   : > { %p1721_p13 = pneg %p1720_p4 }
 0x3a7   : > { %p1727_p1 = por %p1726_p8, %p1725_p2 }
 0x3a9   : > { %p1728_p10 = pnand %p1727_p1, %p1721_p13 }
 0x3ab   : > { %1731 = shalt.err (!%p1728_p10)
}
 0x3ac   : > { %1465 = dma.vmem_to_hbm [thread:$0]  (%p2117_p12), %s2050_s15, 128, %s2048_s10, %s1130_s25  }
 0x3ad PF: > { %s1155_s11 = sand.u32 1, %s1770_s18   ;;  %p2118_p3 = scmp.ne.s32.totalorder %s2110_s29, 0 }
 0x3ae   : > { %p2119_p5 = scmp.ge.s32.totalorder %s1790_s23, 2  ;;  %s1156_s27 = scalar_lea.sflag [#allocation5], %s1155_s11 }
 0x3b0   : > { %p1479_p9 = pnand %p2119_p5, %p2118_p3 }
 0x3b2   : > { %1765 = dma.done.wait (!%p1479_p9), %s1156_s27, 128  }
 0x3b3   : > { %1767 = vsyncadd (!%p1479_p9), %s1156_s27, 4294967168  ;;  %s22_s23 = sadd.s32 1, %s1790_s23   ;;  %s2120_s18 = smov %s1774_s19 }
 0x3b4   : > { %p19_p11 = scmp.ge.s32.totalorder %s22_s23, 4   ;;  %s2121_s19 = smov %s1778_s20 }
 0x3b5   : > { %s2122_s20 = smov %s1972_s6  ;;  %s2123_s21 = smov %s1786_s22 }
 0x3b6   : > { %s2124_s22 = smov %s2126_s12  ;;  %21 = sbr.rel (!%p19_p11) target bundleno = 7 (0x7), region = 102 }
 0x3bd   :  { %1161 = vsyncpa [#allocation4], 1 }
 0x3be   :  { %1163 = vsyncpa [#allocation4 + $0x1], 1 }
 0x3bf   :  { %1164 = vsyncpa [#allocation7], 1 }
 0x3c0   :  { %1165 = vsyncpa [#allocation5], 1 }
 0x3c1   :  { %1167 = vsyncpa [#allocation5 + $0x1], 1 }

</bundles_post_ra>
